<compile_context>
chip_gen: v7x
topology: tpu7x:2x2x1
jax: 0.10.0
libtpu: 0.0.40
codegen_flags: <defaults>
</compile_context>

<pallas_src>
import functools

import jax
import jax.numpy as jnp
from jax import lax
from jax.experimental import pallas as pl
from jax.experimental.pallas import tpu as pltpu

LANE = 128
SUBLANE = 8


def _round_up(x, m):
    return ((x + m - 1) // m) * m


def _vmem_capacity_bytes():
    """Physical VMEM of the current device, conservative fallback = v7x's 64 MiB/TC."""
    try:
        cap = getattr(pltpu.get_tpu_info(), "vmem_capacity_bytes", None)
        if cap:
            return int(cap)
    except Exception:
        pass
    return 64 * 1024 * 1024


def _choose_tile_b(batch, requested):
    """Lane-aligned (multiple of 128) batch tile; >=2 grid steps when the batch allows it (v7x 2 TCs)."""
    tile_b = max(int(requested), LANE)
    tile_b = min(tile_b, _round_up(batch, LANE))
    if _round_up(batch, tile_b) // tile_b < 2 and batch > LANE:
        tile_b = _round_up(pl.cdiv(batch, 2), LANE)
    return tile_b


def mlp_kernel(x_ref, w_in_ref, b_in_ref, w_h_ref, b_h_ref, w_out_t_ref, b_out_ref,
               o_ref, *, num_hidden_layers):
    """One batch tile of the full MLP forward.

    x_ref:       [TB, D_in]          f32  (cast to bf16 on the VPU, hidden under the pipeline)
    w_in_ref:    [D_in, N]           bf16   b_in_ref:  [1, N]          f32
    w_h_ref:     [L, N, N]           bf16   b_h_ref:   [L, 1, N]       f32
    w_out_t_ref: [out_pad8, N]       bf16   b_out_ref: [out_pad8, 1]   f32
    o_ref:       [out_pad8, TB]      f32  (lane-major: batch along lanes)
    """
    # Input layer + ReLU (bf16 MXU matmul, f32 accumulate / epilogue).
    h = jnp.dot(x_ref[...].astype(jnp.bfloat16), w_in_ref[...],
                preferred_element_type=jnp.float32)
    h = jnp.maximum(h + b_in_ref[...], 0.0)

    # Hidden layers: Linear -> ReLU -> Dropout(p=0.0) == identity.  Static unroll (small L).
    for i in range(num_hidden_layers):
        h = jnp.dot(h.astype(jnp.bfloat16), w_h_ref[i],
                    preferred_element_type=jnp.float32)
        h = jnp.maximum(h + b_h_ref[i], 0.0)

    # Output layer (no activation), produced lane-major: (out_pad8, N) x (TB, N)^T -> (out_pad8, TB).
    out = lax.dot_general(w_out_t_ref[...], h.astype(jnp.bfloat16),
                          dimension_numbers=(((1,), (1,)), ((), ())),
                          preferred_element_type=jnp.float32)
    o_ref[...] = out + b_out_ref[...]


def prepare_params(params):
    """One-time parameter prep (hoisted out of the per-call path).

    Returns (w_in_bf, b_in_2d, w_h_bf, b_h_2d, w_out_t_bf, b_out_2d) in kernel-argument order.
    """
    w_in, b_in, w_h, b_h, w_out, b_out = params
    d_in, nodes = w_in.shape
    out_dim = w_out.shape[1]
    layers = 0 if w_h is None else w_h.shape[0]
    out_pad8 = _round_up(max(out_dim, 1), SUBLANE)

    w_in_bf = w_in.astype(jnp.bfloat16)
    b_in_2d = b_in.astype(jnp.float32).reshape(1, nodes)

    if layers > 0:
        w_h_bf = w_h.astype(jnp.bfloat16)
        b_h_2d = b_h.astype(jnp.float32).reshape(layers, 1, nodes)
    else:  # keep operand shapes valid; the kernel loop never touches them
        w_h_bf = jnp.zeros((1, nodes, nodes), jnp.bfloat16)
        b_h_2d = jnp.zeros((1, 1, nodes), jnp.float32)

    # Transposed, sublane-padded output projection (lane-major narrow output).
    w_out_t = jnp.zeros((out_pad8, nodes), jnp.float32).at[:out_dim, :].set(
        w_out.astype(jnp.float32).T)
    w_out_t_bf = w_out_t.astype(jnp.bfloat16)
    b_out_2d = jnp.zeros((out_pad8, 1), jnp.float32).at[:out_dim, 0].set(
        b_out.astype(jnp.float32))

    return (w_in_bf, b_in_2d, w_h_bf, b_h_2d, w_out_t_bf, b_out_2d)


def mlp_forward(x, prepared, *, num_hidden_layers, out_dim, tile_b=512):
    """Pallas forward.  x: [batch, input_dim] f32.  Returns [batch, out_dim] f32."""
    w_in_bf, b_in_2d, w_h_bf, b_h_2d, w_out_t_bf, b_out_2d = prepared
    batch, d_in = x.shape
    nodes = w_in_bf.shape[1]
    out_pad8 = w_out_t_bf.shape[0]
    layers = num_hidden_layers

    # ---- batch tiling ---------------------------------------------------------------
    tile_b = _choose_tile_b(batch, tile_b)
    padded_batch = _round_up(batch, tile_b)
    if padded_batch != batch:
        # Padded rows compute relu(bias)-garbage that is sliced off below; never read them.
        x = jnp.pad(x, ((0, padded_batch - batch), (0, 0)))
    grid = (padded_batch // tile_b,)

    # ---- VMEM budget (resident weights + buffered I/O tiles + activations) -----------
    weight_bytes = 2 * (w_in_bf.size + w_h_bf.size + w_out_t_bf.size)
    bias_bytes = 4 * (b_in_2d.size + b_h_2d.size + b_out_2d.size)
    io_bytes = 2 * (tile_b * d_in * 4 + out_pad8 * tile_b * 4)     # double-buffered f32 tiles
    act_bytes = 4 * tile_b * nodes * 4                             # f32/bf16 intermediates (rough)
    budget = 2 * (weight_bytes + bias_bytes + io_bytes) + act_bytes
    vmem_cap = _vmem_capacity_bytes()
    vmem_limit = int(min(max(budget, 32 * 1024 * 1024), vmem_cap - 8 * 1024 * 1024))

    kernel = functools.partial(mlp_kernel, num_hidden_layers=layers)
    out_padded = pl.pallas_call(
        kernel,
        out_shape=jax.ShapeDtypeStruct((out_pad8, padded_batch), jnp.float32),
        grid=grid,
        in_specs=[
            # x (batch-tiled, f32); if DMAs ever become exposed, pipeline_mode=pl.Buffered(3)
            # on this spec and the out_spec is the next knob to try.
            pl.BlockSpec((tile_b, d_in), lambda i: (i, 0)),
            pl.BlockSpec((d_in, nodes), lambda i: (0, 0)),             # w_in   (VMEM-resident)
            pl.BlockSpec((1, nodes), lambda i: (0, 0)),                # b_in
            pl.BlockSpec(w_h_bf.shape, lambda i: (0, 0, 0)),           # w_h
            pl.BlockSpec(b_h_2d.shape, lambda i: (0, 0, 0)),           # b_h
            pl.BlockSpec((out_pad8, nodes), lambda i: (0, 0)),         # w_out^T
            pl.BlockSpec((out_pad8, 1), lambda i: (0, 0)),             # b_out
        ],
        out_specs=pl.BlockSpec((out_pad8, tile_b), lambda i: (0, i)),  # lane-major output
        compiler_params=pltpu.CompilerParams(
            dimension_semantics=("parallel",),
            vmem_limit_bytes=vmem_limit,
        ),
    )(x, w_in_bf, b_in_2d, w_h_bf, b_h_2d, w_out_t_bf, b_out_2d)

    # Slice off padded rows/columns and restore (batch, out_dim) row-major layout.
    return out_padded[:out_dim, :batch].T


def init_params(key, input_dim, layers, nodes, output_dim):
    """Deterministic synthetic parameters (shapes match the PyTorch module, pre-transposed)."""
    ks = jax.random.split(key, 6)
    scale = 0.1
    w_in = scale * jax.random.normal(ks[0], (input_dim, nodes), jnp.float32)
    b_in = scale * jax.random.normal(ks[1], (nodes,), jnp.float32)
    w_h = scale * jax.random.normal(ks[2], (layers, nodes, nodes), jnp.float32)
    b_h = scale * jax.random.normal(ks[3], (layers, nodes), jnp.float32)
    w_out = scale * jax.random.normal(ks[4], (nodes, output_dim), jnp.float32)
    b_out = scale * jax.random.normal(ks[5], (output_dim,), jnp.float32)
    return (w_in, b_in, w_h, b_h, w_out, b_out)


def mlp_reference_f32(x, params, *, num_hidden_layers):
    """Plain-JAX f32 reference of the PyTorch forward (dropout=0, no batchnorm)."""
    w_in, b_in, w_h, b_h, w_out, b_out = params
    h = jnp.maximum(x @ w_in + b_in, 0.0)
    for i in range(num_hidden_layers):
        h = jnp.maximum(h @ w_h[i] + b_h[i], 0.0)
    return h @ w_out + b_out


def mlp_reference_bf16(x, params, *, num_hidden_layers):
    """Reference with the same bf16-matmul / f32-accumulate numerics as the kernel."""
    w_in, b_in, w_h, b_h, w_out, b_out = params
    h = jnp.dot(x.astype(jnp.bfloat16), w_in.astype(jnp.bfloat16),
                preferred_element_type=jnp.float32) + b_in
    h = jnp.maximum(h, 0.0)
    for i in range(num_hidden_layers):
        h = jnp.dot(h.astype(jnp.bfloat16), w_h[i].astype(jnp.bfloat16),
                    preferred_element_type=jnp.float32) + b_h[i]
        h = jnp.maximum(h, 0.0)
    return jnp.dot(h.astype(jnp.bfloat16), w_out.astype(jnp.bfloat16),
                   preferred_element_type=jnp.float32) + b_out


if __name__ == "__main__":
    # Small shapes consistent with the module's forward.  batch=200 exercises the 2-step batch
    # grid (2 x 128-row tiles, both TCs on v7x) and the pad/slice path.
    batch = 200
    input_dim = 16
    layers = 2
    nodes = 32
    output_dim = 1

    key = jax.random.PRNGKey(0)
    kx, kp = jax.random.split(key)
    x = jax.random.normal(kx, (batch, input_dim), jnp.float32)
    params = init_params(kp, input_dim, layers, nodes, output_dim)

    # One-time parameter prep (hoisted out of the per-call path).
    prepared = prepare_params(params)
    prepared = jax.block_until_ready(prepared)

    fwd = jax.jit(functools.partial(mlp_forward,
                                    num_hidden_layers=layers, out_dim=output_dim))
    out = fwd(x, prepared)
    out = jax.block_until_ready(out)
    assert out.shape == (batch, output_dim)

    ref_bf16 = mlp_reference_bf16(x, params, num_hidden_layers=layers)
    ref_f32 = mlp_reference_f32(x, params, num_hidden_layers=layers)
    assert jnp.allclose(out, ref_bf16, atol=1e-3, rtol=1e-2), "mismatch vs bf16-matched reference"
    assert jnp.allclose(out, ref_f32, atol=5e-2, rtol=5e-2), "mismatch vs f32 reference"

    print("KERNEL_OK")
</pallas_src>

<mosaic_0001>
module attributes {stable_mosaic.version = 11 : i64} {
  func.func @mlp_kernel(%arg0: i32, %arg1: memref<128x16xf32, #tpu.memory_space<vmem>>, %arg2: memref<16x32xbf16, #tpu.memory_space<vmem>>, %arg3: memref<1x32xf32, #tpu.memory_space<vmem>>, %arg4: memref<2x32x32xbf16, #tpu.memory_space<vmem>>, %arg5: memref<2x1x32xf32, #tpu.memory_space<vmem>>, %arg6: memref<8x32xbf16, #tpu.memory_space<vmem>>, %arg7: memref<8x1xf32, #tpu.memory_space<vmem>>, %arg8: memref<8x128xf32, #tpu.memory_space<vmem>>) attributes {dimension_semantics = [#tpu.dimension_semantics<parallel>], iteration_bounds = array<i64: 2>, scalar_prefetch = 0 : i64, scratch_operands = 0 : i64, tpu.core_type = #tpu.core_type<tc>, window_params = [{transform_indices = @transform_0, window_bounds = array<i64: 128, 16>}, {pipeline_mode = #tpu.pipeline_mode<synchronous>, transform_indices = @transform_1, window_bounds = array<i64: 16, 32>}, {pipeline_mode = #tpu.pipeline_mode<synchronous>, transform_indices = @transform_2, window_bounds = array<i64: 1, 32>}, {pipeline_mode = #tpu.pipeline_mode<synchronous>, transform_indices = @transform_3, window_bounds = array<i64: 2, 32, 32>}, {pipeline_mode = #tpu.pipeline_mode<synchronous>, transform_indices = @transform_4, window_bounds = array<i64: 2, 1, 32>}, {pipeline_mode = #tpu.pipeline_mode<synchronous>, transform_indices = @transform_5, window_bounds = array<i64: 8, 32>}, {pipeline_mode = #tpu.pipeline_mode<synchronous>, transform_indices = @transform_6, window_bounds = array<i64: 8, 1>}, {transform_indices = @transform_7, window_bounds = array<i64: 8, 128>}]} {
    %c0 = arith.constant 0 : index
    %c0_0 = arith.constant 0 : index
    %0 = vector.load %arg1[%c0, %c0_0] : memref<128x16xf32, #tpu.memory_space<vmem>>, vector<128x16xf32>
    %1 = arith.truncf %0 : vector<128x16xf32> to vector<128x16xbf16>
    %c0_1 = arith.constant 0 : index
    %c0_2 = arith.constant 0 : index
    %2 = vector.load %arg2[%c0_1, %c0_2] : memref<16x32xbf16, #tpu.memory_space<vmem>>, vector<16x32xbf16>
    %cst = arith.constant dense<0.000000e+00> : vector<128x32xf32>
    %3 = tpu.matmul %1, %2, %cst {dimension_numbers = #tpu.dot_dimension_numbers<[1], [0], [0], [1], [0, 0, 1, 1], [], []>} : vector<128x16xbf16>, vector<16x32xbf16>, vector<128x32xf32> -> vector<128x32xf32>
    %c0_3 = arith.constant 0 : index
    %c0_4 = arith.constant 0 : index
    %4 = vector.load %arg3[%c0_3, %c0_4] : memref<1x32xf32, #tpu.memory_space<vmem>>, vector<1x32xf32>
    %5 = vector.broadcast %4 : vector<1x32xf32> to vector<128x32xf32>
    %6 = arith.addf %3, %5 : vector<128x32xf32>
    %cst_5 = arith.constant 0.000000e+00 : f32
    %7 = vector.broadcast %cst_5 : f32 to vector<128x32xf32>
    %8 = arith.maximumf %6, %7 : vector<128x32xf32>
    %9 = arith.truncf %8 : vector<128x32xf32> to vector<128x32xbf16>
    %c0_6 = arith.constant 0 : index
    %c0_7 = arith.constant 0 : index
    %c0_8 = arith.constant 0 : index
    %10 = vector.load %arg4[%c0_6, %c0_7, %c0_8] : memref<2x32x32xbf16, #tpu.memory_space<vmem>>, vector<1x32x32xbf16>
    %11 = vector.shape_cast %10 : vector<1x32x32xbf16> to vector<32x32xbf16>
    %cst_9 = arith.constant dense<0.000000e+00> : vector<128x32xf32>
    %12 = tpu.matmul %9, %11, %cst_9 {dimension_numbers = #tpu.dot_dimension_numbers<[1], [0], [0], [1], [0, 0, 1, 1], [], []>} : vector<128x32xbf16>, vector<32x32xbf16>, vector<128x32xf32> -> vector<128x32xf32>
    %c0_10 = arith.constant 0 : index
    %c0_11 = arith.constant 0 : index
    %c0_12 = arith.constant 0 : index
    %13 = vector.load %arg5[%c0_10, %c0_11, %c0_12] : memref<2x1x32xf32, #tpu.memory_space<vmem>>, vector<1x1x32xf32>
    %14 = vector.shape_cast %13 : vector<1x1x32xf32> to vector<1x32xf32>
    %15 = vector.broadcast %14 : vector<1x32xf32> to vector<128x32xf32>
    %16 = arith.addf %12, %15 : vector<128x32xf32>
    %cst_13 = arith.constant 0.000000e+00 : f32
    %17 = vector.broadcast %cst_13 : f32 to vector<128x32xf32>
    %18 = arith.maximumf %16, %17 : vector<128x32xf32>
    %19 = arith.truncf %18 : vector<128x32xf32> to vector<128x32xbf16>
    %c1 = arith.constant 1 : index
    %c0_14 = arith.constant 0 : index
    %c0_15 = arith.constant 0 : index
    %20 = vector.load %arg4[%c1, %c0_14, %c0_15] : memref<2x32x32xbf16, #tpu.memory_space<vmem>>, vector<1x32x32xbf16>
    %21 = vector.shape_cast %20 : vector<1x32x32xbf16> to vector<32x32xbf16>
    %cst_16 = arith.constant dense<0.000000e+00> : vector<128x32xf32>
    %22 = tpu.matmul %19, %21, %cst_16 {dimension_numbers = #tpu.dot_dimension_numbers<[1], [0], [0], [1], [0, 0, 1, 1], [], []>} : vector<128x32xbf16>, vector<32x32xbf16>, vector<128x32xf32> -> vector<128x32xf32>
    %c1_17 = arith.constant 1 : index
    %c0_18 = arith.constant 0 : index
    %c0_19 = arith.constant 0 : index
    %23 = vector.load %arg5[%c1_17, %c0_18, %c0_19] : memref<2x1x32xf32, #tpu.memory_space<vmem>>, vector<1x1x32xf32>
    %24 = vector.shape_cast %23 : vector<1x1x32xf32> to vector<1x32xf32>
    %25 = vector.broadcast %24 : vector<1x32xf32> to vector<128x32xf32>
    %26 = arith.addf %22, %25 : vector<128x32xf32>
    %cst_20 = arith.constant 0.000000e+00 : f32
    %27 = vector.broadcast %cst_20 : f32 to vector<128x32xf32>
    %28 = arith.maximumf %26, %27 : vector<128x32xf32>
    %c0_21 = arith.constant 0 : index
    %c0_22 = arith.constant 0 : index
    %29 = vector.load %arg6[%c0_21, %c0_22] : memref<8x32xbf16, #tpu.memory_space<vmem>>, vector<8x32xbf16>
    %30 = arith.truncf %28 : vector<128x32xf32> to vector<128x32xbf16>
    %cst_23 = arith.constant dense<0.000000e+00> : vector<8x128xf32>
    %31 = tpu.matmul %29, %30, %cst_23 {dimension_numbers = #tpu.dot_dimension_numbers<[1], [1], [0], [0], [0, 0, 1, 0], [], []>} : vector<8x32xbf16>, vector<128x32xbf16>, vector<8x128xf32> -> vector<8x128xf32>
    %c0_24 = arith.constant 0 : index
    %c0_25 = arith.constant 0 : index
    %32 = vector.load %arg7[%c0_24, %c0_25] : memref<8x1xf32, #tpu.memory_space<vmem>>, vector<8x1xf32>
    %33 = vector.broadcast %32 : vector<8x1xf32> to vector<8x128xf32>
    %34 = arith.addf %31, %33 : vector<8x128xf32>
    %c0_26 = arith.constant 0 : index
    %c0_27 = arith.constant 0 : index
    %35 = vector.load %arg8[%c0_26, %c0_27] : memref<8x128xf32, #tpu.memory_space<vmem>>, vector<8x128xf32>
    tpu.vector_store %arg8[%c0_26, %c0_27], %34 {strides = array<i32>} : memref<8x128xf32, #tpu.memory_space<vmem>>, vector<8x128xf32>,
    return
  }
  func.func @transform_0(%arg0: i32) -> (i32, i32) {
    %c0_i32 = arith.constant 0 : i32
    %c0_i32_0 = arith.constant 0 : i32
    return %arg0, %c0_i32 : i32, i32
  }
  func.func @transform_1(%arg0: i32) -> (i32, i32) {
    %c0_i32 = arith.constant 0 : i32
    %c0_i32_0 = arith.constant 0 : i32
    %c0_i32_1 = arith.constant 0 : i32
    return %c0_i32, %c0_i32_0 : i32, i32
  }
  func.func @transform_2(%arg0: i32) -> (i32, i32) {
    %c0_i32 = arith.constant 0 : i32
    %c0_i32_0 = arith.constant 0 : i32
    %c0_i32_1 = arith.constant 0 : i32
    return %c0_i32, %c0_i32_0 : i32, i32
  }
  func.func @transform_3(%arg0: i32) -> (i32, i32, i32) {
    %c0_i32 = arith.constant 0 : i32
    %c0_i32_0 = arith.constant 0 : i32
    %c0_i32_1 = arith.constant 0 : i32
    %c0_i32_2 = arith.constant 0 : i32
    return %c0_i32, %c0_i32_0, %c0_i32_1 : i32, i32, i32
  }
  func.func @transform_4(%arg0: i32) -> (i32, i32, i32) {
    %c0_i32 = arith.constant 0 : i32
    %c0_i32_0 = arith.constant 0 : i32
    %c0_i32_1 = arith.constant 0 : i32
    %c0_i32_2 = arith.constant 0 : i32
    return %c0_i32, %c0_i32_0, %c0_i32_1 : i32, i32, i32
  }
  func.func @transform_5(%arg0: i32) -> (i32, i32) {
    %c0_i32 = arith.constant 0 : i32
    %c0_i32_0 = arith.constant 0 : i32
    %c0_i32_1 = arith.constant 0 : i32
    return %c0_i32, %c0_i32_0 : i32, i32
  }
  func.func @transform_6(%arg0: i32) -> (i32, i32) {
    %c0_i32 = arith.constant 0 : i32
    %c0_i32_0 = arith.constant 0 : i32
    %c0_i32_1 = arith.constant 0 : i32
    return %c0_i32, %c0_i32_0 : i32, i32
  }
  func.func @transform_7(%arg0: i32) -> (i32, i32) {
    %c0_i32 = arith.constant 0 : i32
    %c0_i32_0 = arith.constant 0 : i32
    return %c0_i32, %arg0 : i32, i32
  }
}

</mosaic_0001>

<bundles_post_ra>
// kernel: mlp_forward.1
= control target key start
LH: loop header
LB: loop body
LE: loop exit
PB: predicated region body
PF: predicated region fallthrough
CT: control target
= control target key end

     0   :  { %s1164_s24 = smov 0   ;;  %s1276_s0 = inlined_call_operand.vmem [shape: f32[256,16], index: 0, kind: input, shape index: {}]   ;;  %s1277_s1 = inlined_call_operand.vmem [shape: bf16[16,32], index: 1, kind: input, shape index: {}]   ;;  %s1278_s2 = inlined_call_operand.vmem [shape: f32[1,32], index: 2, kind: input, shape index: {}]   ;;  %s1279_s3 = inlined_call_operand.vmem [shape: bf16[2,32,32], index: 3, kind: input, shape index: {}]   ;;  %s1280_s4 = inlined_call_operand.vmem [shape: f32[2,1,32], index: 4, kind: input, shape index: {}]   ;;  %s1281_s5 = inlined_call_operand.vmem [shape: bf16[8,32], index: 5, kind: input, shape index: {}]   ;;  %s1282_s6 = inlined_call_operand.vmem [shape: f32[8,1], index: 6, kind: input, shape index: {}]   ;;  %s1283_s7 = inlined_call_operand.vmem [shape: f32[8,256], index: 7, kind: output, shape index: {}]  }
   0x1 LB: > { %s1170_s25 = sadd.s32 4294967295, %s1119_s24   ;;  %p936_p0 = scmp.ge.s32.totalorder %s1119_s24, 1  ;;  %s1119_s24 = sphi %s1164_s24, %s17_s24  }
   0x2   : > { %p238_p1 = scmp.lt.s32.totalorder %s1119_s24, 3 }
   0x4   : > { %p239_p2 = pnand %p936_p0, %p238_p1 }
   0x5   : > { %v1108_v0 = vld [vmem:[%s1277_s1] sm:$0xff] (!%p239_p2)   ;;  %s937_s28 = sshll.u32 (!%p239_p2), %s1170_s25, 4  ;;  %vm319_vm0 = vcmask (!%p239_p2), 130048   ;;  %v1110_v26 = vld [vmem:[%s1279_s3 + $0x8] sm:$0xff] (!%p239_p2)   ;;  %v1111_v27 = vld [vmem:[%s1279_s3 + $0x10] sm:$0xff] (!%p239_p2)   ;;  %vm488_vm1 = vcmask (!%p239_p2), 261120  }
   0x6   : > { %242 = sbr.rel (%p239_p2) target bundleno = 964 (0x3c4), region = 48  ;;  %p270_p3 = scmp.lt.s32.totalorder (!%p239_p2), %s937_s28, 31  ;;  %1018 = vmatprep.subr.bf16.mxu0 (!%p239_p2), %v1108_v0  ;;  %v1109_v25 = vld [vmem:[%s1279_s3] sm:$0xff] (!%p239_p2)   ;;  %v1112_v28 = vld [vmem:[%s1279_s3 + $0x18] sm:$0xff] (!%p239_p2)   ;;  %vm1122_vm2 = vmmov (!%p239_p2), 0  }
   0x7   : > { %1019 = vmatpush3.bf16.msra.mxu0 (!%p239_p2), %v1108_v0  ;;  %1036 = vmatprep.subr.bf16.mxu1 (!%p239_p2), %v1109_v25  ;;  %v940_v29 = vld [vmem:[%s1278_s2] ss:$0 sm:$0xff] (!%p239_p2)  ;;  %p275_p4 = scmp.lt.s32.totalorder (!%p239_p2), %s1170_s25, 1 }
   0x8   : > { %1037 = vmatpush3.bf16.msra.mxu1 (!%p239_p2), %v1109_v25  ;;  %1056 = vmatprep.subr.bf16.mxu0 (!%p239_p2), %v1111_v27 }
   0x9   : > { %1038 = vmatprep.subr.bf16.mxu1 (!%p239_p2), %v1110_v26 }
   0xc   : > { %1039 = vmatpush3.bf16.msra.mxu1 (!%p239_p2), %v1110_v26 }
   0xd   : > { %s1285_s28 = smov (!%p270_p3, %s937_s28), 31  ;;  %s1287_s25 = smov (!%p275_p4, %s1170_s25), 1 }
   0xe   : > { %s938_s29 = sshll.u32 %s1285_s28, 3  ;;  %s939_s30 = sshll.u32 %s1287_s25, 3 }
   0xf   : > { %s1181_s9 = scalar_lea.vmem %s1276_s0, %s938_s29  ;;  %s278_s10 = scalar_lea.vmem %s1283_s7, %s939_s30 }
  0x10   : > { %v280_v1 = vld [vmem:[%s1181_s9] sm:$0xff]  ;;  %v281_v2 = vld [vmem:[%s1181_s9 + $0x8] sm:$0xff]  ;;  %v282_v3 = vld [vmem:[%s1181_s9 + $0x10] sm:$0xff] }
  0x11   : > { %v296_v4 = vpack.c.bf16 %v281_v2, %v280_v1  ;;  %v283_v5 = vld [vmem:[%s1181_s9 + $0x18] sm:$0xff]  ;;  %v284_v6 = vld [vmem:[%s1181_s9 + $0x20] sm:$0xff]  ;;  %v285_v7 = vld [vmem:[%s1181_s9 + $0x28] sm:$0xff] }
  0x12   : > { %v297_v8 = vpack.c.bf16 %v283_v5, %v282_v3  ;;  %v298_v9 = vpack.c.bf16 %v285_v7, %v284_v6  ;;  %v286_v10 = vld [vmem:[%s1181_s9 + $0x30] sm:$0xff]  ;;  %v287_v11 = vld [vmem:[%s1181_s9 + $0x38] sm:$0xff]  ;;  %v288_v12 = vld [vmem:[%s1181_s9 + $0x40] sm:$0xff] }
  0x13   : > { %1020 = vmatprep.mubr.msk.bf16.mxu0 %vm319_vm0, %v296_v4  ;;  %v289_v13 = vld [vmem:[%s1181_s9 + $0x48] sm:$0xff]  ;;  %v299_v14 = vpack.c.bf16 %v287_v11, %v286_v10  ;;  %v290_v16 = vld [vmem:[%s1181_s9 + $0x50] sm:$0xff]  ;;  %v291_v17 = vld [vmem:[%s1181_s9 + $0x58] sm:$0xff] }
  0x14   : > { %1021 = vmatmul.mubr.msk.bf16.vlgmr.msra.gmra.mrb[0].mxu0 %vm319_vm0, %v297_v8  ;;  %v300_v15 = vpack.c.bf16 %v289_v13, %v288_v12  ;;  %v292_v18 = vld [vmem:[%s1181_s9 + $0x60] sm:$0xff]  ;;  %v293_v19 = vld [vmem:[%s1181_s9 + $0x68] sm:$0xff]  ;;  %v301_v20 = vpack.c.bf16 %v291_v17, %v290_v16  ;;  %v294_v22 = vld [vmem:[%s1181_s9 + $0x70] sm:$0xff] }
  0x15   : > { %1024 = vmatprep.mubr.msk.bf16.mxu0 %vm319_vm0, %v298_v9  ;;  %v302_v21 = vpack.c.bf16 %v293_v19, %v292_v18  ;;  %v295_v23 = vld [vmem:[%s1181_s9 + $0x78] sm:$0xff]  ;;  %1057 = vmatpush3.bf16.msra.mxu0 %v1111_v27 }
  0x16   : > { %v303_v24 = vpack.c.bf16 %v295_v23, %v294_v22  ;;  %1058 = vmatprep.subr.bf16.mxu0 %v1112_v28  ;;  %v950_v22 = vld [vmem:[%s1280_s4] ss:$0 sm:$0xff] }
  0x19   : > { %1059 = vmatpush3.bf16.msra.mxu0 %v1112_v28 }
  0x1c   : > { %1025 = vmatmul.mubr.msk.bf16.gmra.mrb[4].mxu0 %vm319_vm0, %v299_v14 }
  0x1d   : > { %1028 = vmatprep.mubr.msk.bf16.mxu0 %vm319_vm0, %v300_v15 }
  0x24   : > { %1029 = vmatmul.mubr.msk.bf16.gmra.mrb[8].mxu0 %vm319_vm0, %v301_v20 }
  0x25   : > { %1032 = vmatprep.mubr.msk.bf16.mxu0 %vm319_vm0, %v302_v21 }
  0x2c   : > { %1033 = vmatmul.mubr.msk.bf16.gmra.mrb[12].mxu0 %vm319_vm0, %v303_v24 }
  0xe7   : > { %v1022_v30 = vpop.f32.mrb[0].mxu0 }
  0xe8   : > { %v387_v31 = vadd.f32 %v1022_v30, %v940_v29  ;;  %v378_v32 = vpop.f32.mrb[1].mxu0 }
  0xe9   : > { %v379_v33 = vadd.f32 %v940_v29, %v378_v32  ;;  %v1023_v34 = vpop.f32.mrb[2].mxu0 }
  0xea   : > { %v390_v35 = vadd.f32 %v1023_v34, %v940_v29  ;;  %v381_v36 = vpop.f32.mrb[3].mxu0  ;;  %v443_v38 = vmax.f32 %v387_v31, 0.0 }
  0xeb   : > { %v382_v37 = vadd.f32 %v940_v29, %v381_v36  ;;  %v441_v40 = vmax.f32 %v379_v33, 0.0 }
  0xec   : > { %v444_v39 = vmax.f32 %v390_v35, 0.0 }
  0xed   : > { %v442_v41 = vmax.f32 %v382_v37, 0.0 }
  0xee   : > { %v458_v42 = vpack.c.bf16 %v444_v39, %v443_v38 }
  0xef   : > { %v1026_v43 = vpop.f32.mrb[4].mxu0  ;;  %v457_v44 = vpack.c.bf16 %v442_v41, %v441_v40 }
  0xf0   : > { %v403_v45 = vadd.f32 %v1026_v43, %v940_v29  ;;  %v394_v46 = vpop.f32.mrb[5].mxu0 }
  0xf1   : > { %v395_v47 = vadd.f32 %v940_v29, %v394_v46  ;;  %v1027_v48 = vpop.f32.mrb[6].mxu0  ;;  %1040 = vmatprep.mubr.msk.bf16.mxu1 %vm488_vm1, %v457_v44 }
  0xf2   : > { %v447_v49 = vmax.f32 %v403_v45, 0.0  ;;  %v406_v50 = vadd.f32 %v1027_v48, %v940_v29  ;;  %v397_v51 = vpop.f32.mrb[7].mxu0  ;;  %1041 = vmatmul.mubr.msk.bf16.vlgmr.msra.gmra.mrb[0].mxu1 %vm488_vm1, %v458_v42 }
  0xf3   : > { %v445_v52 = vmax.f32 %v395_v47, 0.0  ;;  %v398_v53 = vadd.f32 %v940_v29, %v397_v51 }
  0xf4   : > { %v448_v54 = vmax.f32 %v406_v50, 0.0 }
  0xf5   : > { %v446_v55 = vmax.f32 %v398_v53, 0.0 }
  0xf6   : > { %v460_v56 = vpack.c.bf16 %v448_v54, %v447_v49 }
  0xf7   : > { %v459_v57 = vpack.c.bf16 %v446_v55, %v445_v52  ;;  %v1030_v58 = vpop.f32.mrb[8].mxu0 }
  0xf8   : > { %v419_v59 = vadd.f32 %v1030_v58, %v940_v29  ;;  %v410_v60 = vpop.f32.mrb[9].mxu0 }
  0xf9   : > { %1044 = vmatprep.mubr.msk.bf16.mxu1 %vm488_vm1, %v459_v57  ;;  %v411_v61 = vadd.f32 %v940_v29, %v410_v60  ;;  %v1031_v62 = vpop.f32.mrb[10].mxu0 }
  0xfa   : > { %1045 = vmatmul.mubr.msk.bf16.gmra.mrb[4].mxu1 %vm488_vm1, %v460_v56  ;;  %v451_v63 = vmax.f32 %v419_v59, 0.0  ;;  %v422_v0 = vadd.f32 %v1031_v62, %v940_v29  ;;  %v413_v1 = vpop.f32.mrb[11].mxu0 }
  0xfb   : > { %v449_v2 = vmax.f32 %v411_v61, 0.0  ;;  %v414_v3 = vadd.f32 %v940_v29, %v413_v1 }
  0xfc   : > { %v452_v4 = vmax.f32 %v422_v0, 0.0 }
  0xfd   : > { %v450_v5 = vmax.f32 %v414_v3, 0.0 }
  0xfe   : > { %v462_v6 = vpack.c.bf16 %v452_v4, %v451_v63 }
  0xff   : > { %v461_v7 = vpack.c.bf16 %v450_v5, %v449_v2  ;;  %v1034_v8 = vpop.f32.mrb[12].mxu0 }
 0x100   : > { %v435_v9 = vadd.f32 %v1034_v8, %v940_v29  ;;  %v426_v10 = vpop.f32.mrb[13].mxu0 }
 0x101   : > { %1048 = vmatprep.mubr.msk.bf16.mxu1 %vm488_vm1, %v461_v7  ;;  %v427_v11 = vadd.f32 %v940_v29, %v426_v10  ;;  %v1035_v12 = vpop.f32.mrb[14].mxu0 }
 0x102   : > { %1049 = vmatmul.mubr.msk.bf16.gmra.mrb[8].mxu1 %vm488_vm1, %v462_v6  ;;  %v455_v13 = vmax.f32 %v435_v9, 0.0  ;;  %v438_v14 = vadd.f32 %v1035_v12, %v940_v29  ;;  %v429_v15 = vpop.f32.mrb[15].mxu0 }
 0x103   : > { %v453_v16 = vmax.f32 %v427_v11, 0.0  ;;  %v430_v17 = vadd.f32 %v940_v29, %v429_v15  ;;  %v1121_v15 = vmov 0.0  }
 0x104   : > { %v456_v18 = vmax.f32 %v438_v14, 0.0  ;;  %1076 = vmatprep.subr.bf16.mxu1 %v1121_v15 }
 0x105   : > { %v454_v19 = vmax.f32 %v430_v17, 0.0  ;;  %v1123_v17 = vmov 0  }
 0x106   : > { %v464_v20 = vpack.c.bf16 %v456_v18, %v455_v13  ;;  %1107 = vset.pattern.permute.xlu0 %v1123_v17  ;;  %v966_v18 = vld [vmem:[%s1280_s4 + $0x1] ss:$0 sm:$0xff] }
 0x107   : > { %v463_v21 = vpack.c.bf16 %v454_v19, %v453_v16  ;;  %v805_v16 = vld [vmem:[%s1282_s6] sm:$0xff] }
 0x108   : > { %808 = vperm.xlu0 %1107, %v805_v16  }
 0x109   : > { %1052 = vmatprep.mubr.msk.bf16.mxu1 %vm488_vm1, %v463_v21 }
 0x10a   : > { %1053 = vmatmul.mubr.msk.bf16.gmra.mrb[12].mxu1 %vm488_vm1, %v464_v20 }
 0x10b   : > { %1092 = vmatprep.mubr.msk.bf16.mxu1 %vm1122_vm2, %v1121_v15 }
 0x1c5   : > { %v1042_v23 = vpop.f32.mrb[0].mxu1 }
 0x1c6   : > { %v556_v24 = vadd.f32 %v1042_v23, %v950_v22  ;;  %v547_v25 = vpop.f32.mrb[1].mxu1 }
 0x1c7   : > { %v548_v26 = vadd.f32 %v950_v22, %v547_v25  ;;  %v1043_v27 = vpop.f32.mrb[2].mxu1 }
 0x1c8   : > { %v559_v28 = vadd.f32 %v1043_v27, %v950_v22  ;;  %v550_v30 = vpop.f32.mrb[3].mxu1  ;;  %v612_v31 = vmax.f32 %v556_v24, 0.0 }
 0x1c9   : > { %v551_v29 = vadd.f32 %v950_v22, %v550_v30  ;;  %v610_v33 = vmax.f32 %v548_v26, 0.0 }
 0x1ca   : > { %v613_v32 = vmax.f32 %v559_v28, 0.0 }
 0x1cb   : > { %v611_v34 = vmax.f32 %v551_v29, 0.0 }
 0x1cc   : > { %v627_v35 = vpack.c.bf16 %v613_v32, %v612_v31 }
 0x1cd   : > { %v626_v36 = vpack.c.bf16 %v611_v34, %v610_v33  ;;  %v1046_v37 = vpop.f32.mrb[4].mxu1 }
 0x1ce   : > { %v572_v38 = vadd.f32 %v1046_v37, %v950_v22  ;;  %v563_v39 = vpop.f32.mrb[5].mxu1 }
 0x1cf   : > { %v564_v40 = vadd.f32 %v950_v22, %v563_v39  ;;  %v1047_v41 = vpop.f32.mrb[6].mxu1  ;;  %1060 = vmatprep.mubr.msk.bf16.mxu0 %vm488_vm1, %v626_v36 }
 0x1d0   : > { %v616_v42 = vmax.f32 %v572_v38, 0.0  ;;  %v575_v43 = vadd.f32 %v1047_v41, %v950_v22  ;;  %v566_v44 = vpop.f32.mrb[7].mxu1  ;;  %1061 = vmatmul.mubr.msk.bf16.vlgmr.msra.gmra.mrb[16].mxu0 %vm488_vm1, %v627_v35 }
 0x1d1   : > { %v614_v45 = vmax.f32 %v564_v40, 0.0  ;;  %v567_v46 = vadd.f32 %v950_v22, %v566_v44 }
 0x1d2   : > { %v617_v47 = vmax.f32 %v575_v43, 0.0 }
 0x1d3   : > { %v615_v48 = vmax.f32 %v567_v46, 0.0 }
 0x1d4   : > { %v629_v49 = vpack.c.bf16 %v617_v47, %v616_v42 }
 0x1d5   : > { %v628_v50 = vpack.c.bf16 %v615_v48, %v614_v45  ;;  %v1050_v51 = vpop.f32.mrb[8].mxu1 }
 0x1d6   : > { %v588_v52 = vadd.f32 %v1050_v51, %v950_v22  ;;  %v579_v53 = vpop.f32.mrb[9].mxu1 }
 0x1d7   : > { %1064 = vmatprep.mubr.msk.bf16.mxu0 %vm488_vm1, %v628_v50  ;;  %v580_v54 = vadd.f32 %v950_v22, %v579_v53  ;;  %v1051_v55 = vpop.f32.mrb[10].mxu1 }
 0x1d8   : > { %1065 = vmatmul.mubr.msk.bf16.gmra.mrb[20].mxu0 %vm488_vm1, %v629_v49  ;;  %v620_v56 = vmax.f32 %v588_v52, 0.0  ;;  %v591_v57 = vadd.f32 %v1051_v55, %v950_v22  ;;  %v582_v58 = vpop.f32.mrb[11].mxu1 }
 0x1d9   : > { %v618_v59 = vmax.f32 %v580_v54, 0.0  ;;  %v583_v60 = vadd.f32 %v950_v22, %v582_v58 }
 0x1da   : > { %v621_v61 = vmax.f32 %v591_v57, 0.0 }
 0x1db   : > { %v619_v62 = vmax.f32 %v583_v60, 0.0 }
 0x1dc   : > { %v631_v63 = vpack.c.bf16 %v621_v61, %v620_v56 }
 0x1dd   : > { %v630_v0 = vpack.c.bf16 %v619_v62, %v618_v59  ;;  %v1054_v1 = vpop.f32.mrb[12].mxu1 }
 0x1de   : > { %v604_v2 = vadd.f32 %v1054_v1, %v950_v22  ;;  %v595_v3 = vpop.f32.mrb[13].mxu1 }
 0x1df   : > { %1068 = vmatprep.mubr.msk.bf16.mxu0 %vm488_vm1, %v630_v0  ;;  %v596_v4 = vadd.f32 %v950_v22, %v595_v3  ;;  %v1055_v5 = vpop.f32.mrb[14].mxu1 }
 0x1e0   : > { %1069 = vmatmul.mubr.msk.bf16.gmra.mrb[24].mxu0 %vm488_vm1, %v631_v63  ;;  %v624_v6 = vmax.f32 %v604_v2, 0.0  ;;  %v607_v7 = vadd.f32 %v1055_v5, %v950_v22  ;;  %v598_v8 = vpop.f32.mrb[15].mxu1 }
 0x1e1   : > { %v622_v9 = vmax.f32 %v596_v4, 0.0  ;;  %v599_v10 = vadd.f32 %v950_v22, %v598_v8 }
 0x1e2   : > { %v625_v11 = vmax.f32 %v607_v7, 0.0 }
 0x1e3   : > { %v623_v12 = vmax.f32 %v599_v10, 0.0 }
 0x1e4   : > { %v633_v13 = vpack.c.bf16 %v625_v11, %v624_v6 }
 0x1e5   : > { %v632_v14 = vpack.c.bf16 %v623_v12, %v622_v9 }
 0x1e7   : > { %1072 = vmatprep.mubr.msk.bf16.mxu0 %vm488_vm1, %v632_v14 }
 0x1e8   : > { %1073 = vmatmul.mubr.msk.bf16.gmra.mrb[28].mxu0 %vm488_vm1, %v633_v13 }
 0x2a3   : > { %v1062_v19 = vpop.f32.mrb[16].mxu0 }
 0x2a4   : > { %v726_v20 = vadd.f32 %v1062_v19, %v966_v18  ;;  %v717_v21 = vpop.f32.mrb[17].mxu0 }
 0x2a5   : > { %v718_v22 = vadd.f32 %v966_v18, %v717_v21  ;;  %v1063_v23 = vpop.f32.mrb[18].mxu0  ;;  %v809_v21 = vpop.permute.xlu0 %808 }
 0x2a6   : > { %v729_v24 = vadd.f32 %v1063_v23, %v966_v18  ;;  %v720_v25 = vpop.f32.mrb[19].mxu0  ;;  %v782_v27 = vmax.f32 %v726_v20, 0.0  ;;  %v796_v20 = vld [vmem:[%s1281_s5] sm:$0xf] }
 0x2a7   : > { %v721_v26 = vadd.f32 %v966_v18, %v720_v25  ;;  %v780_v30 = vmax.f32 %v718_v22, 0.0 }
 0x2a8   : > { %v783_v28 = vmax.f32 %v729_v24, 0.0 }
 0x2a9   : > { %v781_v29 = vmax.f32 %v721_v26, 0.0 }
 0x2aa   : > { %v798_v31 = vpack.c.bf16 %v783_v28, %v782_v27 }
 0x2ab   : > { %v797_v32 = vpack.c.bf16 %v781_v29, %v780_v30  ;;  %v1066_v33 = vpop.f32.mrb[20].mxu0 }
 0x2ac   : > { %v742_v34 = vadd.f32 %v1066_v33, %v966_v18  ;;  %v733_v35 = vpop.f32.mrb[21].mxu0  ;;  %v818_v51 = vsel %vm488_vm1, %v798_v31, 0 }
 0x2ad   : > { %v734_v36 = vadd.f32 %v966_v18, %v733_v35  ;;  %v1067_v37 = vpop.f32.mrb[22].mxu0  ;;  %v815_v38 = vsel %vm488_vm1, %v797_v32, 0 }
 0x2ae   : > { %v745_v39 = vadd.f32 %v1067_v37, %v966_v18  ;;  %v736_v40 = vpop.f32.mrb[23].mxu0  ;;  %1077 = vmatpush3.bf16.xpose.msra.mxu1 %v815_v38  ;;  %v786_v42 = vmax.f32 %v742_v34, 0.0 }
 0x2af   : > { %v737_v41 = vadd.f32 %v966_v18, %v736_v40  ;;  %1078 = vmatprep.subr.bf16.mxu1 %v1121_v15  ;;  %v784_v44 = vmax.f32 %v734_v36, 0.0 }
 0x2b0   : > { %v787_v43 = vmax.f32 %v745_v39, 0.0 }
 0x2b1   : > { %v785_v45 = vmax.f32 %v737_v41, 0.0 }
 0x2b2   : > { %v800_v46 = vpack.c.bf16 %v787_v43, %v786_v42 }
 0x2b3   : > { %v799_v47 = vpack.c.bf16 %v785_v45, %v784_v44  ;;  %v1070_v48 = vpop.f32.mrb[24].mxu0 }
 0x2b4   : > { %v758_v49 = vadd.f32 %v1070_v48, %v966_v18  ;;  %v749_v50 = vpop.f32.mrb[25].mxu0  ;;  %v824_v14 = vsel %vm488_vm1, %v800_v46, 0 }
 0x2b5   : > { %v750_v52 = vadd.f32 %v966_v18, %v749_v50  ;;  %v1071_v53 = vpop.f32.mrb[26].mxu0  ;;  %v821_v2 = vsel %vm488_vm1, %v799_v47, 0 }
 0x2b6   : > { %1079 = vmatpush3.bf16.xpose.msra.mxu1 %v818_v51  ;;  %v790_v54 = vmax.f32 %v758_v49, 0.0  ;;  %v761_v55 = vadd.f32 %v1071_v53, %v966_v18  ;;  %v752_v56 = vpop.f32.mrb[27].mxu0 }
 0x2b7   : > { %v788_v57 = vmax.f32 %v750_v52, 0.0  ;;  %v753_v58 = vadd.f32 %v966_v18, %v752_v56  ;;  %1080 = vmatprep.subr.bf16.mxu1 %v1121_v15 }
 0x2b8   : > { %v791_v59 = vmax.f32 %v761_v55, 0.0 }
 0x2b9   : > { %v789_v60 = vmax.f32 %v753_v58, 0.0 }
 0x2ba   : > { %v802_v61 = vpack.c.bf16 %v791_v59, %v790_v54 }
 0x2bb   : > { %v801_v62 = vpack.c.bf16 %v789_v60, %v788_v57  ;;  %v1074_v63 = vpop.f32.mrb[28].mxu0 }
 0x2bc   : > { %v774_v0 = vadd.f32 %v1074_v63, %v966_v18  ;;  %v765_v1 = vpop.f32.mrb[29].mxu0  ;;  %v830_v17 = vsel %vm488_vm1, %v802_v61, 0 }
 0x2bd   : > { %v766_v3 = vadd.f32 %v966_v18, %v765_v1  ;;  %v1075_v4 = vpop.f32.mrb[30].mxu0  ;;  %v827_v16 = vsel %vm488_vm1, %v801_v62, 0 }
 0x2be   : > { %1081 = vmatpush3.bf16.xpose.msra.mxu1 %v821_v2  ;;  %v794_v5 = vmax.f32 %v774_v0, 0.0  ;;  %v777_v6 = vadd.f32 %v1075_v4, %v966_v18  ;;  %v768_v7 = vpop.f32.mrb[31].mxu0 }
 0x2bf   : > { %1082 = vmatprep.subr.bf16.mxu1 %v1121_v15  ;;  %v792_v8 = vmax.f32 %v766_v3, 0.0  ;;  %v769_v9 = vadd.f32 %v966_v18, %v768_v7 }
 0x2c0   : > { %v795_v10 = vmax.f32 %v777_v6, 0.0 }
 0x2c1   : > { %v793_v11 = vmax.f32 %v769_v9, 0.0 }
 0x2c2   : > { %v804_v12 = vpack.c.bf16 %v795_v10, %v794_v5 }
 0x2c3   : > { %v803_v13 = vpack.c.bf16 %v793_v11, %v792_v8 }
 0x2c4   : > { %v836_v19 = vsel %vm488_vm1, %v804_v12, 0 }
 0x2c5   : > { %v833_v18 = vsel %vm488_vm1, %v803_v13, 0 }
 0x2c6   : > { %1083 = vmatpush3.bf16.xpose.msra.mxu1 %v824_v14 }
 0x2c7   : > { %1084 = vmatprep.subr.bf16.mxu1 %v1121_v15 }
 0x2ce   : > { %1085 = vmatpush3.bf16.xpose.msra.mxu1 %v827_v16 }
 0x2cf   : > { %1086 = vmatprep.subr.bf16.mxu1 %v1121_v15 }
 0x2d6   : > { %1087 = vmatpush3.bf16.xpose.msra.mxu1 %v830_v17 }
 0x2d7   : > { %1088 = vmatprep.subr.bf16.mxu1 %v1121_v15 }
 0x2de   : > { %1089 = vmatpush3.bf16.xpose.msra.mxu1 %v833_v18 }
 0x2df   : > { %1090 = vmatprep.subr.bf16.mxu1 %v1121_v15 }
 0x2e6   : > { %1091 = vmatpush3.bf16.xpose.msra.mxu1 %v836_v19 }
 0x2ed   : > { %1093 = vmatmul.mubr.msk.bf16.vlgmr.msra.gmra.mrb[16].mxu1 %vm488_vm1, %v796_v20 }
 0x3c0   : > { %v872_v22 = vpop.f32.mrb[16].mxu1 }
 0x3c1   : > { %v873_v23 = vadd.f32 %v872_v22, %v809_v21  ;;  %v1094_v15 = vpop.f32.mrb[17].mxu1 }
 0x3c2   : > { %v875_v24 = vpop.f32.mrb[18].mxu1 }
 0x3c3   : > { %878 = vst [vmem:[%s278_s10] sm:$0xff] %v873_v23  ;;  %v1095_v25 = vpop.f32.mrb[19].mxu1 }
 0x3c4 PF: > { %s17_s24 = sadd.s32 1, %s1119_s24  }
 0x3c5   : > { %p14_p5 = scmp.ge.s32.totalorder %s17_s24, 4  }
 0x3c7   :  { %16 = sbr.rel (!%p14_p5) target bundleno = 1 (0x1), region = 80 }

</bundles_post_ra>
